<compile_context>
chip_gen: v7x
topology: tpu7x:2x2x1
jax: 0.10.0
libtpu: 0.0.40
codegen_flags: <defaults>
</compile_context>

<pallas_src>
import functools
import math

import jax
import jax.numpy as jnp
from jax.experimental import pallas as pl
from jax.experimental.pallas import tpu as pltpu


def _round_up(x, m):
    return (x + m - 1) // m * m


def _pick_tile(dim, max_block, granule):
    """Largest tile <= max_block (multiple of `granule`) that divides
    round_up(dim, granule) when possible, so no wrapper-side jnp.pad copy of
    the operand is needed."""
    padded = _round_up(max(int(dim), 1), granule)
    max_block = max(granule, (int(max_block) // granule) * granule)
    if padded <= max_block:
        return padded
    t = max_block
    while t >= granule:
        if padded % t == 0:
            return t
        t -= granule
    return max_block


def _vmem_capacity_bytes():
    try:
        return int(pltpu.get_tpu_info().vmem_capacity_bytes)
    except Exception:
        return 64 * 2 ** 20  # conservative fallback (v7x per-TC VMEM)


def _apply_activation(y, activation):
    if activation is None:
        return y
    if callable(activation):
        return activation(y)
    if activation == "relu":
        return jnp.maximum(y, 0.0)
    if activation == "gelu":
        return jax.nn.gelu(y)
    if activation == "tanh":
        return jnp.tanh(y)
    if activation == "sigmoid":
        return jax.nn.sigmoid(y)
    raise ValueError(f"unsupported activation: {activation!r}")


def _mlp_kernel(x_ref, w_ref, b_ref, o_ref, acc_ref, *, activation, out_scale):
    k = pl.program_id(2)

    @pl.when(k == 0)
    def _():
        acc_ref[...] = jnp.zeros_like(acc_ref)

    acc_ref[...] += jnp.dot(x_ref[...], w_ref[...],
                            preferred_element_type=jnp.float32)

    @pl.when(k == pl.num_programs(2) - 1)
    def _():
        y = acc_ref[...]
        if out_scale != 1.0:
            # dropout's 1/(1-p) scale, folded once into the (tm, tn) epilogue
            # instead of a per-(i,j,k)-step (tm, tk) multiply.
            y = y * out_scale
        y = y + b_ref[...].astype(jnp.float32)
        y = _apply_activation(y, activation)
        o_ref[...] = y.astype(o_ref.dtype)


def mlp_layer(feats, weight_t, bias=None, *, activation=None,
              dropout_p=0.0, training=False, dropout_key=None,
              compute_dtype=None,
              block_rows=512, block_cols=512, block_k=1024):
    """Forward of MLPLayer: dropout -> linear -> activation.

    feats:    [N, in_dim]
    weight_t: [in_dim, out_dim]   (transpose of nn.Linear.weight)
    bias:     [out_dim] or None
    """
    n, in_dim = feats.shape
    in_dim_w, out_dim = weight_t.shape
    assert in_dim == in_dim_w, (in_dim, in_dim_w)
    out_dtype = feats.dtype

    if bias is None:
        bias = jnp.zeros((out_dim,), jnp.float32)

    # ---- dropout (mask in wrapper, 1/(1-p) scale fused into kernel epilogue)
    dropout_p = float(dropout_p)
    out_scale = 1.0
    if dropout_p > 0.0 and training:
        if dropout_key is None:
            dropout_key = jax.random.PRNGKey(0)
        keep = jax.random.bernoulli(dropout_key, 1.0 - dropout_p, feats.shape)
        feats = jnp.where(keep, feats, 0).astype(feats.dtype)
        out_scale = 1.0 / (1.0 - dropout_p)

    if compute_dtype is not None:
        feats = feats.astype(compute_dtype)
        weight_t = weight_t.astype(compute_dtype)

    x_bytes = feats.dtype.itemsize
    w_bytes = weight_t.dtype.itemsize
    o_bytes = jnp.dtype(out_dtype).itemsize

    # ---- tile selection -----------------------------------------------------
    # Sublane packing: 16 rows/tile for bf16 operands, 32 for int8/fp8, 8 f32.
    sub = {4: 8, 2: 16, 1: 32}.get(x_bytes, 8)
    tm = _pick_tile(n, block_rows, sub)
    tn = _pick_tile(out_dim, block_cols, 128)   # lane-dense output stores
    tk = _pick_tile(in_dim, block_k, 128)

    def est_vmem(tm_, tn_, tk_):
        return (2 * tm_ * tk_ * x_bytes        # x (double-buffered)
                + 2 * tk_ * tn_ * w_bytes      # W (double-buffered)
                + 2 * tn_ * 4                  # bias
                + 2 * tm_ * tn_ * o_bytes      # output
                + tm_ * tn_ * 4)               # f32 accumulator scratch

    # Generation-aware budget: ~100 MiB on 128-MiB-VMEM chips (v5e/v6e),
    # ~51 MiB on v7x (64 MiB per TC), leaving headroom for compiler scratch.
    vmem_budget = int(_vmem_capacity_bytes() * 0.80)
    while est_vmem(tm, tn, tk) > vmem_budget:
        if tk > 512:
            tk = max(512, _round_up(tk // 2, 128))
        elif tn > 256:
            tn = max(256, _round_up(tn // 2, 128))
        elif tm > 256:
            tm = max(256, _round_up(tm // 2, sub))
        elif tk > 128:
            tk = max(128, _round_up(tk // 2, 128))
        else:
            break

    n_pad = _round_up(n, tm)
    out_pad = _round_up(out_dim, tn)
    k_pad = _round_up(in_dim, tk)

    # Pads are only taken when the tile picker could not find dividing tiles
    # (ragged shapes); for aligned shapes no extra HBM copy of X/W happens.
    if (n_pad, k_pad) != (n, in_dim):
        feats = jnp.pad(feats, ((0, n_pad - n), (0, k_pad - in_dim)))
    if (k_pad, out_pad) != (in_dim, out_dim):
        weight_t = jnp.pad(weight_t,
                           ((0, k_pad - in_dim), (0, out_pad - out_dim)))
    bias2d = jnp.pad(bias.reshape(1, out_dim).astype(jnp.float32),
                     ((0, 0), (0, out_pad - out_dim)))

    grid = (n_pad // tm, out_pad // tn, k_pad // tk)

    kernel = functools.partial(_mlp_kernel, activation=activation,
                               out_scale=float(out_scale))

    in_specs = [
        pl.BlockSpec((tm, tk), lambda i, j, k: (i, k)),   # x tile
        pl.BlockSpec((tk, tn), lambda i, j, k: (k, j)),   # W tile
        pl.BlockSpec((1, tn), lambda i, j, k: (0, j)),    # bias tile
    ]
    out_spec = pl.BlockSpec((tm, tn), lambda i, j, k: (i, j))

    vmem_limit = int(min(vmem_budget,
                         max(2 * est_vmem(tm, tn, tk), 32 * 2 ** 20)))

    trans = 0
    if activation in ("gelu", "tanh", "sigmoid"):
        trans = n_pad * out_pad
    cost = pl.CostEstimate(
        flops=2 * n_pad * k_pad * out_pad,
        transcendentals=trans,
        bytes_accessed=(grid[1] * n_pad * k_pad * x_bytes     # X re-streamed per col-tile
                        + grid[0] * k_pad * out_pad * w_bytes  # W re-streamed per row-tile
                        + out_pad * 4
                        + n_pad * out_pad * o_bytes),
    )

    out = pl.pallas_call(
        kernel,
        out_shape=jax.ShapeDtypeStruct((n_pad, out_pad), out_dtype),
        grid_spec=pltpu.PrefetchScalarGridSpec(
            num_scalar_prefetch=0,
            grid=grid,
            in_specs=in_specs,
            out_specs=out_spec,
            scratch_shapes=[pltpu.VMEM((tm, tn), jnp.float32)],
        ),
        compiler_params=pltpu.CompilerParams(
            dimension_semantics=("parallel", "parallel", "arbitrary"),
            vmem_limit_bytes=vmem_limit,
        ),
        cost_estimate=cost,
    )(feats, weight_t, bias2d)

    if (n_pad, out_pad) != (n, out_dim):
        out = out[:n, :out_dim]
    return out


def init_mlp_params(key, in_dim, out_dim, activation=None):
    """Xavier-uniform weight (gain matches reset_parameters), zero bias."""
    gain = math.sqrt(2.0) if activation == "relu" else 1.0
    bound = gain * math.sqrt(6.0 / (in_dim + out_dim))
    # PyTorch weight is [out_dim, in_dim]; we store its transpose directly.
    w_t = jax.random.uniform(key, (in_dim, out_dim), jnp.float32,
                             minval=-bound, maxval=bound)
    b = jnp.zeros((out_dim,), jnp.float32)
    return w_t, b


if __name__ == "__main__":
    key = jax.random.PRNGKey(0)
    k1, k2, k3, k4 = jax.random.split(key, 4)

    # --- test 1: small ReLU MLP, f32, eval mode (dropout = identity) ---
    N, IN_DIM, OUT_DIM = 8, 32, 64
    feats = jax.random.normal(k1, (N, IN_DIM), jnp.float32)
    w_t, b = init_mlp_params(k2, IN_DIM, OUT_DIM, activation="relu")
    out = jax.block_until_ready(mlp_layer(feats, w_t, b, activation="relu"))
    ref = jnp.maximum(feats @ w_t + b[None, :], 0.0)
    assert out.shape == (N, OUT_DIM)
    assert jnp.allclose(out, ref, atol=1e-5, rtol=1e-5)

    # --- test 2: ragged shapes (padding path), gelu, multi-step tiled grid ---
    N2, IN2, OUT2 = 50, 200, 300
    feats2 = jax.random.normal(k3, (N2, IN2), jnp.float32)
    w2, b2 = init_mlp_params(k4, IN2, OUT2, activation=None)
    out2 = jax.block_until_ready(
        mlp_layer(feats2, w2, b2, activation="gelu",
                  block_rows=32, block_cols=128, block_k=128))
    ref2 = jax.nn.gelu(feats2 @ w2 + b2[None, :])
    assert out2.shape == (N2, OUT2)
    assert jnp.allclose(out2, ref2, atol=1e-3, rtol=1e-3)

    # --- test 3: bf16 operands for the MXU, f32 accumulation ---
    out3 = jax.block_until_ready(
        mlp_layer(feats, w_t, b, activation="relu",
                  compute_dtype=jnp.bfloat16))
    assert out3.shape == (N, OUT_DIM)
    assert jnp.allclose(out3, ref, atol=1e-1, rtol=5e-2)

    # --- test 4: training-mode dropout (mask in wrapper, scale in epilogue) ---
    p = 0.5
    dkey = jax.random.PRNGKey(123)
    out4 = jax.block_until_ready(
        mlp_layer(feats, w_t, b, activation="relu",
                  dropout_p=p, training=True, dropout_key=dkey))
    keep = jax.random.bernoulli(dkey, 1.0 - p, feats.shape)
    ref4 = jnp.maximum(
        (jnp.where(keep, feats, 0.0) @ w_t) * (1.0 / (1.0 - p)) + b[None, :],
        0.0)
    assert out4.shape == (N, OUT_DIM)
    assert jnp.allclose(out4, ref4, atol=1e-4, rtol=1e-4)

    print("KERNEL_OK")
</pallas_src>

<mosaic_0001>
module attributes {stable_mosaic.version = 11 : i64} {
  func.func @_mlp_kernel(%arg0: i32, %arg1: i32, %arg2: i32, %arg3: memref<8x128xf32, #tpu.memory_space<vmem>>, %arg4: memref<128x128xf32, #tpu.memory_space<vmem>>, %arg5: memref<1x128xf32, #tpu.memory_space<vmem>>, %arg6: memref<8x128xf32, #tpu.memory_space<vmem>>, %arg7: memref<8x128xf32, #tpu.memory_space<vmem>>) attributes {dimension_semantics = [#tpu.dimension_semantics<parallel>, #tpu.dimension_semantics<parallel>, #tpu.dimension_semantics<arbitrary>], iteration_bounds = array<i64: 1, 1, 1>, scalar_prefetch = 0 : i64, scratch_operands = 1 : i64, tpu.core_type = #tpu.core_type<tc>, window_params = [{transform_indices = @transform_0, window_bounds = array<i64: 8, 128>}, {transform_indices = @transform_1, window_bounds = array<i64: 128, 128>}, {transform_indices = @transform_2, window_bounds = array<i64: 1, 128>}, {transform_indices = @transform_3, window_bounds = array<i64: 8, 128>}]} {
    %c0_i32 = arith.constant 0 : i32
    %0 = arith.cmpi eq, %arg2, %c0_i32 : i32
    %1 = arith.extui %0 : i1 to i32
    %c0_i32_0 = arith.constant 0 : i32
    %2 = arith.cmpi ne, %1, %c0_i32_0 : i32
    scf.if %2 {
      %cst_10 = arith.constant 0.000000e+00 : f32
      %12 = vector.broadcast %cst_10 : f32 to vector<8x128xf32>
      %c0_11 = arith.constant 0 : index
      %c0_12 = arith.constant 0 : index
      %13 = vector.load %arg7[%c0_11, %c0_12] : memref<8x128xf32, #tpu.memory_space<vmem>>, vector<8x128xf32>
      tpu.vector_store %arg7[%c0_11, %c0_12], %12 {strides = array<i32>} : memref<8x128xf32, #tpu.memory_space<vmem>>, vector<8x128xf32>,
    } else {
    }
    %c0 = arith.constant 0 : index
    %c0_1 = arith.constant 0 : index
    %3 = vector.load %arg7[%c0, %c0_1] : memref<8x128xf32, #tpu.memory_space<vmem>>, vector<8x128xf32>
    %c0_2 = arith.constant 0 : index
    %c0_3 = arith.constant 0 : index
    %4 = vector.load %arg3[%c0_2, %c0_3] : memref<8x128xf32, #tpu.memory_space<vmem>>, vector<8x128xf32>
    %c0_4 = arith.constant 0 : index
    %c0_5 = arith.constant 0 : index
    %5 = vector.load %arg4[%c0_4, %c0_5] : memref<128x128xf32, #tpu.memory_space<vmem>>, vector<128x128xf32>
    %cst = arith.constant dense<0.000000e+00> : vector<8x128xf32>
    %6 = tpu.matmul %4, %5, %cst {dimension_numbers = #tpu.dot_dimension_numbers<[1], [0], [0], [1], [0, 0, 1, 1], [], []>} : vector<8x128xf32>, vector<128x128xf32>, vector<8x128xf32> -> vector<8x128xf32>
    %7 = arith.addf %3, %6 : vector<8x128xf32>
    %c0_6 = arith.constant 0 : index
    %c0_7 = arith.constant 0 : index
    %8 = vector.load %arg7[%c0_6, %c0_7] : memref<8x128xf32, #tpu.memory_space<vmem>>, vector<8x128xf32>
    tpu.vector_store %arg7[%c0_6, %c0_7], %7 {strides = array<i32>} : memref<8x128xf32, #tpu.memory_space<vmem>>, vector<8x128xf32>,
    %c0_i32_8 = arith.constant 0 : i32
    %9 = arith.cmpi eq, %arg2, %c0_i32_8 : i32
    %10 = arith.extui %9 : i1 to i32
    %c0_i32_9 = arith.constant 0 : i32
    %11 = arith.cmpi ne, %10, %c0_i32_9 : i32
    scf.if %11 {
      %c0_10 = arith.constant 0 : index
      %c0_11 = arith.constant 0 : index
      %12 = vector.load %arg7[%c0_10, %c0_11] : memref<8x128xf32, #tpu.memory_space<vmem>>, vector<8x128xf32>
      %c0_12 = arith.constant 0 : index
      %c0_13 = arith.constant 0 : index
      %13 = vector.load %arg5[%c0_12, %c0_13] : memref<1x128xf32, #tpu.memory_space<vmem>>, vector<1x128xf32>
      %14 = vector.broadcast %13 : vector<1x128xf32> to vector<8x128xf32>
      %15 = arith.addf %12, %14 : vector<8x128xf32>
      %cst_14 = arith.constant 0.000000e+00 : f32
      %16 = vector.broadcast %cst_14 : f32 to vector<8x128xf32>
      %17 = arith.maximumf %15, %16 : vector<8x128xf32>
      %c0_15 = arith.constant 0 : index
      %c0_16 = arith.constant 0 : index
      %18 = vector.load %arg6[%c0_15, %c0_16] : memref<8x128xf32, #tpu.memory_space<vmem>>, vector<8x128xf32>
      tpu.vector_store %arg6[%c0_15, %c0_16], %17 {strides = array<i32>} : memref<8x128xf32, #tpu.memory_space<vmem>>, vector<8x128xf32>,
    } else {
    }
    return
  }
  func.func @transform_0(%arg0: i32, %arg1: i32, %arg2: i32) -> (i32, i32) {
    %c0_i32 = arith.constant 0 : i32
    return %arg0, %arg2 : i32, i32
  }
  func.func @transform_1(%arg0: i32, %arg1: i32, %arg2: i32) -> (i32, i32) {
    %c0_i32 = arith.constant 0 : i32
    return %arg2, %arg1 : i32, i32
  }
  func.func @transform_2(%arg0: i32, %arg1: i32, %arg2: i32) -> (i32, i32) {
    %c0_i32 = arith.constant 0 : i32
    %c0_i32_0 = arith.constant 0 : i32
    return %c0_i32, %arg1 : i32, i32
  }
  func.func @transform_3(%arg0: i32, %arg1: i32, %arg2: i32) -> (i32, i32) {
    %c0_i32 = arith.constant 0 : i32
    return %arg0, %arg1 : i32, i32
  }
}

</mosaic_0001>

<bundles_post_ra>
// kernel: tpu_custom_call.1
= control target key start
LH: loop header
LB: loop body
LE: loop exit
PB: predicated region body
PF: predicated region fallthrough
CT: control target
= control target key end

     0   :  { %8 = vsyncpa [#allocation4], 0  ;;  %s397_s0 = inlined_call_operand.hbm [shape: f32[8,128], index: 0, kind: input, shape index: {}]   ;;  %s398_s1 = inlined_call_operand.hbm [shape: f32[128,128], index: 1, kind: input, shape index: {}]   ;;  %s399_s2 = inlined_call_operand.vmem [shape: f32[1,128], index: 2, kind: input, shape index: {}]   ;;  %s400_s3 = inlined_call_operand.hbm [shape: f32[8,128], index: 3, kind: output, shape index: {}]  }
   0x1   :  { %9 = vsyncpa [#allocation7], 0 }
   0x2   :  { %10 = vsyncpa [#allocation5], 0  ;;  %s323_s12 = smov [#allocation3]   ;;  %s324_s14 = smov [#allocation6]  }
   0x3   :  { %s17_s13 = sshll.u32 %s323_s12, 4  ;;  %s26_s15 = sshll.u32 %s324_s14, 4  ;;  %s18_s13 = int_to_ptr.vmem [resolvable:$true] %s17_s13  ;;  %s351_s15 = int_to_ptr.vmem [resolvable:$true] %s26_s15 }
   0x4   :  { %s251_s18 = scalar_lea.hbm %s397_s0, 128 }
   0x5   :  { %p252_p0 = scmp.ne.s32.totalorder %s397_s0, %s251_s18  ;;  %p255_p1 = scmp.lt.u32.totalorder %s251_s18, %s397_s0 }
   0x7   :  { %p257_p2 = pnand %p255_p1, %p252_p0 }
   0x9   :  { %260 = shalt.err (!%p257_p2)
}
   0xa   :  { %s261_s23 = scalar_lea.vmem %s18_s13, 128  ;;  %p266_p4 = scmp.lt.s32.totalorder %s18_s13, %s18_s13 }
   0xb   :  { %p262_p3 = scmp.ne.s32.totalorder %s18_s13, %s261_s23  ;;  %p267_p5 = scmp.lt.s32.totalorder %s261_s23, %s261_s23 }
   0xd   :  { %p268_p6 = por %p267_p5, %p266_p4 }
   0xf   :  { %p269_p7 = pnand %p268_p6, %p262_p3 }
  0x11   :  { %272 = shalt.err (!%p269_p7)
}
  0x12   :  { %20 = dma.hbm_to_vmem [thread:$0]  %s397_s0, 128, %s18_s13, [#allocation4]  }
  0x13   :  { %s273_s28 = scalar_lea.hbm %s398_s1, 2048 }
  0x14   :  { %p274_p8 = scmp.ne.s32.totalorder %s398_s1, %s273_s28  ;;  %p277_p9 = scmp.lt.u32.totalorder %s273_s28, %s398_s1 }
  0x16   :  { %p279_p10 = pnand %p277_p9, %p274_p8 }
  0x18   :  { %282 = shalt.err (!%p279_p10)
}
  0x19   :  { %s283_s6 = scalar_lea.vmem %s351_s15, 2048  ;;  %p288_p12 = scmp.lt.s32.totalorder %s351_s15, %s351_s15 }
  0x1a   :  { %p284_p11 = scmp.ne.s32.totalorder %s351_s15, %s283_s6  ;;  %p289_p13 = scmp.lt.s32.totalorder %s283_s6, %s283_s6 }
  0x1c   :  { %p290_p0 = por %p289_p13, %p288_p12 }
  0x1e   :  { %p291_p1 = pnand %p290_p0, %p284_p11 }
  0x20   :  { %294 = shalt.err (!%p291_p1)
}
  0x21   :  { %s325_s0 = smov 128   ;;  %s326_s7 = smov 8  }
  0x22   :  { %32 = dma.hbm_to_vmem [thread:$0]  %s398_s1, 2048, %s351_s15, [#allocation7], %s325_s0, %s325_s0, %s326_s7  }
  0x23   :  { %317 = dma.done.wait [#allocation4], 128  }
  0x24   :  { %318 = vsyncadd [#allocation4], 4294967168 }
  0x25   :  { %319 = dma.done.wait [#allocation7], 2048  }
  0x26   :  { %320 = vsyncadd [#allocation7], 4294965248  ;;  %v327_v0 = vmov 0.0|0.0   ;;  %vm328_vm0 = vmmov 0   ;;  %v329_v1 = vmov 0.0   ;;  %v48_v2 = vld [vmem:[#allocation6] sm:$0xff] }
  0x27   :  { %219 = vmatprep.subr.bf16.mxu0 %v327_v0  ;;  %216 = vmatprep.mubr.msk.f32.mxu0 %vm328_vm0, %v329_v1  ;;  %v49_v3 = vld [vmem:[#allocation6 + $0x8] sm:$0xff]  ;;  %v50_v4 = vld [vmem:[#allocation6 + $0x10] sm:$0xff]  ;;  %v51_v6 = vld [vmem:[#allocation6 + $0x18] sm:$0xff]  ;;  %s330_s11 = smov [#allocation8]  }
  0x28   :  { %v220_v5 = vpack.c.bf16 %v49_v3, %v48_v2  ;;  %v223_v7 = vpack.c.bf16 %v51_v6, %v50_v4  ;;  %v52_v8 = vld [vmem:[#allocation6 + $0x20] sm:$0xff]  ;;  %v53_v9 = vld [vmem:[#allocation6 + $0x28] sm:$0xff]  ;;  %v54_v11 = vld [vmem:[#allocation6 + $0x30] sm:$0xff]  ;;  %s156_s12 = sshll.u32 %s330_s11, 4  ;;  %s157_s12 = int_to_ptr.vmem [resolvable:$true] %s156_s12 }
  0x29   :  { %v226_v10 = vpack.c.bf16 %v53_v9, %v52_v8  ;;  %v55_v12 = vld [vmem:[#allocation6 + $0x38] sm:$0xff]  ;;  %v56_v14 = vld [vmem:[#allocation6 + $0x40] sm:$0xff]  ;;  %v57_v15 = vld [vmem:[#allocation6 + $0x48] sm:$0xff]  ;;  %s295_s13 = scalar_lea.vmem %s157_s12, 128  ;;  %p300_p3 = scmp.lt.s32.totalorder %s157_s12, %s157_s12 }
  0x2a   :  { %221 = vmatpush3.bf16.msra.mxu0 %v220_v5  ;;  %v229_v13 = vpack.c.bf16 %v55_v12, %v54_v11  ;;  %v232_v16 = vpack.c.bf16 %v57_v15, %v56_v14  ;;  %v58_v17 = vld [vmem:[#allocation6 + $0x50] sm:$0xff]  ;;  %v59_v18 = vld [vmem:[#allocation6 + $0x58] sm:$0xff]  ;;  %v60_v20 = vld [vmem:[#allocation6 + $0x60] sm:$0xff]  ;;  %p296_p2 = scmp.ne.s32.totalorder %s157_s12, %s295_s13  ;;  %p301_p4 = scmp.lt.s32.totalorder %s295_s13, %s295_s13 }
  0x2b   :  { %222 = vmatprep.subr.bf16.mxu0 %v327_v0  ;;  %v235_v19 = vpack.c.bf16 %v59_v18, %v58_v17  ;;  %v61_v21 = vld [vmem:[#allocation6 + $0x68] sm:$0xff]  ;;  %v62_v23 = vld [vmem:[#allocation6 + $0x70] sm:$0xff]  ;;  %v63_v24 = vld [vmem:[#allocation6 + $0x78] sm:$0xff] }
  0x2c   :  { %v238_v22 = vpack.c.bf16 %v61_v21, %v60_v20  ;;  %v241_v25 = vpack.c.bf16 %v63_v24, %v62_v23  ;;  %v47_v26 = vld [vmem:[#allocation3] sm:$0xff]  ;;  %p302_p5 = por %p301_p4, %p300_p3 }
  0x2d   :  { %v166_v27 = vld [vmem:[%s399_s2] ss:$0 sm:$0xff] }
  0x2e   :  { %224 = vmatpush3.bf16.msra.mxu0 %v223_v7  ;;  %p303_p6 = pnand %p302_p5, %p296_p2 }
  0x2f   :  { %225 = vmatprep.subr.bf16.mxu0 %v327_v0 }
  0x32   :  { %227 = vmatpush3.bf16.msra.mxu0 %v226_v10 }
  0x33   :  { %228 = vmatprep.subr.bf16.mxu0 %v327_v0 }
  0x36   :  { %230 = vmatpush3.bf16.msra.mxu0 %v229_v13 }
  0x37   :  { %231 = vmatprep.subr.bf16.mxu0 %v327_v0 }
  0x3a   :  { %233 = vmatpush3.bf16.msra.mxu0 %v232_v16 }
  0x3b   :  { %234 = vmatprep.subr.bf16.mxu0 %v327_v0 }
  0x3e   :  { %236 = vmatpush3.bf16.msra.mxu0 %v235_v19 }
  0x3f   :  { %237 = vmatprep.subr.bf16.mxu0 %v327_v0 }
  0x42   :  { %239 = vmatpush3.bf16.msra.mxu0 %v238_v22 }
  0x43   :  { %240 = vmatprep.subr.bf16.mxu0 %v327_v0 }
  0x46   :  { %242 = vmatpush3.bf16.msra.mxu0 %v241_v25 }
  0x49   :  { %217 = vmatmul.mubr.f32.vlgmr.msra.gmra.mrb[0].mxu0 %v47_v26 }
 0x11c   :  { %v130_v28 = vpop.f32.mrb[0].mxu0 }
 0x11d   :  { %v147_v29 = vadd.f32 %v166_v27, %v130_v28  ;;  %v218_v30 = vpop.f32.mrb[1].mxu0 }
 0x11f   :  { %v148_v31 = vmax.f32 %v147_v29, 0.0 }
 0x121   :  { %149 = vst [vmem:[#allocation8] sm:$0xff] %v148_v31 }
 0x122   :  { %306 = shalt.err (!%p303_p6)
}
 0x123   :  { %s307_s16 = scalar_lea.hbm %s400_s3, 128 }
 0x124   :  { %p308_p7 = scmp.ne.s32.totalorder %s400_s3, %s307_s16  ;;  %p311_p8 = scmp.lt.u32.totalorder %s307_s16, %s400_s3 }
 0x126   :  { %p313_p9 = pnand %p311_p8, %p308_p7 }
 0x128   :  { %316 = shalt.err (!%p313_p9)
}
 0x129   :  { %159 = dma.vmem_to_hbm [thread:$0]  %s157_s12, 128, %s400_s3, [#allocation5]  }
 0x12a   :  { %321 = dma.done.wait [#allocation5], 128  }
 0x12b   :  { %322 = vsyncadd [#allocation5], 4294967168 }
 0x12c   :  { %163 = vsyncpa [#allocation4], 1 }
 0x12d   :  { %164 = vsyncpa [#allocation7], 1 }
 0x12e   :  { %165 = vsyncpa [#allocation5], 1 }

</bundles_post_ra>
